<compile_context>
chip_gen: v7x
topology: tpu7x:2x2x1
jax: 0.10.0
libtpu: 0.0.40
codegen_flags: <defaults>
</compile_context>

<pallas_src>
import functools

import jax
import jax.numpy as jnp
from jax.experimental import pallas as pl
from jax.experimental.pallas import tpu as pltpu


# TODO(synk): `fn` is an arbitrary wrapped module supplied at construction
# time (e.g. attention); it is modeled as identity here since its definition
# is not part of this module.
def _fn_identity(x):
    return x


def _round_up(x, m):
    return ((x + m - 1) // m) * m


def _pick_tile(full, pref, mult):
    """Largest tile <= pref that is a multiple of `mult` and divides `full`.

    If `full` is not a multiple of `mult`, fall back to the full dimension
    (block_shape == array dim is always legal)."""
    if full % mult != 0:
        return full
    t = min(pref, full)
    t = max(mult, (t // mult) * mult)
    while full % t != 0:
        t -= mult
    return t


def _pick_tile_mxu(full, pref):
    """Prefer 256-multiples (v6e/v7x MXU is 2x256x256); fall back to 128."""
    if full % 256 == 0:
        return _pick_tile(full, pref, 256)
    return _pick_tile(full, pref, 128)


def _vmem_footprint(tm, tk, tn, in_item, out_item):
    # Double-buffered input/output tiles + single f32 accumulator scratch.
    return (2 * (tm * tk + tk * tn + tn) * in_item
            + 2 * tm * tn * out_item
            + tm * tn * 4)


def _proj_kernel(x_ref, w_ref, b_ref, o_ref, acc_ref):
    # x_ref: (tm, tk)  w_ref: (tk, tn)  b_ref: (1, tn)
    # o_ref: (tm, tn)  acc_ref: (tm, tn) f32 scratch (resident across K axis)
    k = pl.program_id(2)

    @pl.when(k == 0)
    def _():
        # Fold the bias into accumulator init: saves a zero-fill pass and an
        # extra VPU add over the (tm, tn) f32 tile at finalize.
        acc_ref[...] = jnp.broadcast_to(
            b_ref[...].astype(jnp.float32), acc_ref.shape
        )

    acc_ref[...] += jnp.dot(
        x_ref[...], w_ref[...], preferred_element_type=jnp.float32
    )

    @pl.when(k == pl.num_programs(2) - 1)
    def _():
        o_ref[...] = acc_ref[...].astype(o_ref.dtype)


@functools.partial(
    jax.jit, static_argnames=("tm", "tn_pref", "tk_pref", "compute_dtype")
)
def post_attention_projection(
    x, w, b, *, tm=512, tn_pref=1024, tk_pref=1024, compute_dtype=None
):
    """x: [B, S, dim*heads], w: [dim*heads, dim] (= W^T), b: [dim] -> [B, S, dim]."""
    x = _fn_identity(x)

    B, S, K = x.shape
    N = w.shape[1]
    M = B * S

    out_dtype = x.dtype
    x2 = x.reshape(M, K)
    if compute_dtype is not None:
        # Optional fast path (e.g. bf16 operands, f32 accumulation).
        x2 = x2.astype(compute_dtype)
        w = w.astype(compute_dtype)
    b2 = b.reshape(1, N)

    in_item = jnp.dtype(x2.dtype).itemsize
    out_item = jnp.dtype(out_dtype).itemsize

    # --- generation-aware VMEM budget ---------------------------------------
    try:
        vmem_cap = int(pltpu.get_tpu_info().vmem_capacity_bytes)
    except Exception:
        vmem_cap = 64 << 20  # conservative fallback (v7x per-TC VMEM)
    budget = int(vmem_cap * 0.7)

    # --- tile selection -----------------------------------------------------
    if M <= tm:
        tm_eff = M                      # full-dim block (always legal)
    else:
        tm_eff = max(8, _round_up(tm, 8))
    tk = _pick_tile_mxu(K, tk_pref)     # MXU-aligned K chunks when possible
    tn = _pick_tile_mxu(N, tn_pref)     # lane-dense output tiles when N % 128 == 0
    # TODO(synk): if K or N is large and NOT 128-aligned, the full-dim fallback
    # tile may exceed VMEM; tiling those would need in-kernel masking.
    # TODO(synk): for tiny dims (N < 128) output stores are lane-masked; a
    # wrapper-side repack of the [M, N] output into a [M*N/128, 128] slab
    # would make them lane-dense.

    # Shrink tiles until the (double-buffered) footprint fits the VMEM budget.
    while _vmem_footprint(tm_eff, tk, tn, in_item, out_item) > budget:
        cand = []
        if tk > 128 and K % 128 == 0:
            cand.append(("k", tk))
        if tn > 128 and N % 128 == 0:
            cand.append(("n", tn))
        if tm_eff > 128:
            cand.append(("m", tm_eff))
        if not cand:
            break
        which = max(cand, key=lambda c: c[1])[0]
        if which == "k":
            tk = _pick_tile(K, tk // 2, 128)
        elif which == "n":
            tn = _pick_tile(N, tn // 2, 128)
        else:
            tm_eff = max(128, _round_up(tm_eff // 2, 8))

    m_blocks = pl.cdiv(M, tm_eff)
    n_blocks = N // tn
    k_blocks = K // tk

    # v7x has 2 TensorCores: keep at least 2 parallel (M x N) blocks when the
    # problem allows it, so the grid can shard across cores.
    if m_blocks * n_blocks < 2 and tn == N and N % 256 == 0:
        tn = N // 2
        n_blocks = 2

    grid = (m_blocks, n_blocks, k_blocks)

    footprint = _vmem_footprint(tm_eff, tk, tn, in_item, out_item)
    vmem_limit = min(vmem_cap, max(32 << 20, footprint + (4 << 20)))

    cost = pl.CostEstimate(
        flops=2 * M * K * N,
        transcendentals=0,
        bytes_accessed=int(
            M * K * n_blocks * in_item      # x re-streamed once per N tile
            + K * N * m_blocks * in_item    # W re-streamed once per M tile
            + M * N * out_item              # output written once
            + N * in_item                   # bias
        ),
    )

    out2 = pl.pallas_call(
        _proj_kernel,
        out_shape=jax.ShapeDtypeStruct((M, N), out_dtype),
        grid_spec=pltpu.PrefetchScalarGridSpec(
            num_scalar_prefetch=0,
            grid=grid,
            in_specs=[
                pl.BlockSpec((tm_eff, tk), lambda i, j, k: (i, k)),  # x tile
                pl.BlockSpec((tk, tn), lambda i, j, k: (k, j)),      # weight tile
                pl.BlockSpec((1, tn), lambda i, j, k: (0, j)),       # bias tile
            ],
            out_specs=pl.BlockSpec((tm_eff, tn), lambda i, j, k: (i, j)),
            scratch_shapes=[pltpu.VMEM((tm_eff, tn), jnp.float32)],
        ),
        compiler_params=pltpu.CompilerParams(
            dimension_semantics=("parallel", "parallel", "arbitrary"),
            vmem_limit_bytes=int(vmem_limit),
        ),
        cost_estimate=cost,
    )(x2, w, b2)

    return out2.reshape(B, S, N)


def _reference(x, w, b):
    return jnp.einsum("bsk,kn->bsn", _fn_identity(x), w) + b


if __name__ == "__main__":
    # Small shapes consistent with the module: dim=32, heads=4 -> in=128.
    B, S, dim, heads = 2, 8, 32, 4
    K = dim * heads

    key = jax.random.PRNGKey(0)
    kx, kw, kb = jax.random.split(key, 3)

    x = jax.random.normal(kx, (B, S, K), dtype=jnp.float32)

    # Deterministic nn.Linear-style init: U(-1/sqrt(in), 1/sqrt(in)).
    bound = 1.0 / jnp.sqrt(jnp.float32(K))
    w = jax.random.uniform(kw, (K, dim), jnp.float32, -bound, bound)  # = W^T
    b = jax.random.uniform(kb, (dim,), jnp.float32, -bound, bound)

    y = post_attention_projection(x, w, b)
    y = jax.block_until_ready(y)

    y_ref = _reference(x, w, b)
    assert y.shape == (B, S, dim)
    assert jnp.allclose(y, y_ref, atol=1e-5, rtol=1e-5)

    print("KERNEL_OK")
</pallas_src>

<mosaic_0001>
module attributes {stable_mosaic.version = 11 : i64} {
  func.func @_proj_kernel(%arg0: i32, %arg1: i32, %arg2: i32, %arg3: memref<16x128xf32, #tpu.memory_space<vmem>>, %arg4: memref<128x32xf32, #tpu.memory_space<vmem>>, %arg5: memref<1x32xf32, #tpu.memory_space<vmem>>, %arg6: memref<16x32xf32, #tpu.memory_space<vmem>>, %arg7: memref<16x32xf32, #tpu.memory_space<vmem>>) attributes {dimension_semantics = [#tpu.dimension_semantics<parallel>, #tpu.dimension_semantics<parallel>, #tpu.dimension_semantics<arbitrary>], iteration_bounds = array<i64: 1, 1, 1>, scalar_prefetch = 0 : i64, scratch_operands = 1 : i64, tpu.core_type = #tpu.core_type<tc>, window_params = [{transform_indices = @transform_0, window_bounds = array<i64: 16, 128>}, {transform_indices = @transform_1, window_bounds = array<i64: 128, 32>}, {transform_indices = @transform_2, window_bounds = array<i64: 1, 32>}, {transform_indices = @transform_3, window_bounds = array<i64: 16, 32>}]} {
    %c0_i32 = arith.constant 0 : i32
    %0 = arith.cmpi eq, %arg2, %c0_i32 : i32
    %1 = arith.extui %0 : i1 to i32
    %c0_i32_0 = arith.constant 0 : i32
    %2 = arith.cmpi ne, %1, %c0_i32_0 : i32
    scf.if %2 {
      %c0_10 = arith.constant 0 : index
      %c0_11 = arith.constant 0 : index
      %12 = vector.load %arg5[%c0_10, %c0_11] : memref<1x32xf32, #tpu.memory_space<vmem>>, vector<1x32xf32>
      %13 = vector.shape_cast %12 : vector<1x32xf32> to vector<1x32xf32>
      %14 = vector.broadcast %13 : vector<1x32xf32> to vector<16x32xf32>
      %c0_12 = arith.constant 0 : index
      %c0_13 = arith.constant 0 : index
      %15 = vector.load %arg7[%c0_12, %c0_13] : memref<16x32xf32, #tpu.memory_space<vmem>>, vector<16x32xf32>
      tpu.vector_store %arg7[%c0_12, %c0_13], %14 {strides = array<i32>} : memref<16x32xf32, #tpu.memory_space<vmem>>, vector<16x32xf32>,
    } else {
    }
    %c0 = arith.constant 0 : index
    %c0_1 = arith.constant 0 : index
    %3 = vector.load %arg7[%c0, %c0_1] : memref<16x32xf32, #tpu.memory_space<vmem>>, vector<16x32xf32>
    %c0_2 = arith.constant 0 : index
    %c0_3 = arith.constant 0 : index
    %4 = vector.load %arg3[%c0_2, %c0_3] : memref<16x128xf32, #tpu.memory_space<vmem>>, vector<16x128xf32>
    %c0_4 = arith.constant 0 : index
    %c0_5 = arith.constant 0 : index
    %5 = vector.load %arg4[%c0_4, %c0_5] : memref<128x32xf32, #tpu.memory_space<vmem>>, vector<128x32xf32>
    %cst = arith.constant dense<0.000000e+00> : vector<16x32xf32>
    %6 = tpu.matmul %4, %5, %cst {dimension_numbers = #tpu.dot_dimension_numbers<[1], [0], [0], [1], [0, 0, 1, 1], [], []>} : vector<16x128xf32>, vector<128x32xf32>, vector<16x32xf32> -> vector<16x32xf32>
    %7 = arith.addf %3, %6 : vector<16x32xf32>
    %c0_6 = arith.constant 0 : index
    %c0_7 = arith.constant 0 : index
    %8 = vector.load %arg7[%c0_6, %c0_7] : memref<16x32xf32, #tpu.memory_space<vmem>>, vector<16x32xf32>
    tpu.vector_store %arg7[%c0_6, %c0_7], %7 {strides = array<i32>} : memref<16x32xf32, #tpu.memory_space<vmem>>, vector<16x32xf32>,
    %c0_i32_8 = arith.constant 0 : i32
    %9 = arith.cmpi eq, %arg2, %c0_i32_8 : i32
    %10 = arith.extui %9 : i1 to i32
    %c0_i32_9 = arith.constant 0 : i32
    %11 = arith.cmpi ne, %10, %c0_i32_9 : i32
    scf.if %11 {
      %c0_10 = arith.constant 0 : index
      %c0_11 = arith.constant 0 : index
      %12 = vector.load %arg7[%c0_10, %c0_11] : memref<16x32xf32, #tpu.memory_space<vmem>>, vector<16x32xf32>
      %c0_12 = arith.constant 0 : index
      %c0_13 = arith.constant 0 : index
      %13 = vector.load %arg6[%c0_12, %c0_13] : memref<16x32xf32, #tpu.memory_space<vmem>>, vector<16x32xf32>
      tpu.vector_store %arg6[%c0_12, %c0_13], %12 {strides = array<i32>} : memref<16x32xf32, #tpu.memory_space<vmem>>, vector<16x32xf32>,
    } else {
    }
    return
  }
  func.func @transform_0(%arg0: i32, %arg1: i32, %arg2: i32) -> (i32, i32) {
    %c0_i32 = arith.constant 0 : i32
    return %arg0, %arg2 : i32, i32
  }
  func.func @transform_1(%arg0: i32, %arg1: i32, %arg2: i32) -> (i32, i32) {
    %c0_i32 = arith.constant 0 : i32
    return %arg2, %arg1 : i32, i32
  }
  func.func @transform_2(%arg0: i32, %arg1: i32, %arg2: i32) -> (i32, i32) {
    %c0_i32 = arith.constant 0 : i32
    %c0_i32_0 = arith.constant 0 : i32
    return %c0_i32, %arg1 : i32, i32
  }
  func.func @transform_3(%arg0: i32, %arg1: i32, %arg2: i32) -> (i32, i32) {
    %c0_i32 = arith.constant 0 : i32
    return %arg0, %arg1 : i32, i32
  }
}

</mosaic_0001>

<bundles_post_ra>
// kernel: post_attention_projection.1
= control target key start
LH: loop header
LB: loop body
LE: loop exit
PB: predicated region body
PF: predicated region fallthrough
CT: control target
= control target key end

     0   :  { %vm26_vm0 = vcmask 261120   ;;  %s363_s0 = inlined_call_operand.vmem [shape: f32[16,128], index: 0, kind: input, shape index: {}]   ;;  %s364_s1 = inlined_call_operand.vmem [shape: f32[128,32], index: 1, kind: input, shape index: {}]   ;;  %s365_s2 = inlined_call_operand.vmem [shape: f32[1,32], index: 2, kind: input, shape index: {}]   ;;  %s366_s3 = inlined_call_operand.hbm [shape: f32[16,32], index: 3, kind: output, shape index: {}]  }
   0x1   :  { %v33_v0 = vld [vmem:[%s364_s1] sm:$0xff]  ;;  %v34_v1 = vld [vmem:[%s364_s1 + $0x8] sm:$0xff]  ;;  %v35_v2 = vld [vmem:[%s364_s1 + $0x10] sm:$0xff] }
   0x2   :  { %v206_v3 = vpack.c.bf16 %v34_v1, %v33_v0  ;;  %v36_v4 = vld [vmem:[%s364_s1 + $0x18] sm:$0xff]  ;;  %v37_v6 = vld [vmem:[%s364_s1 + $0x20] sm:$0xff]  ;;  %v38_v7 = vld [vmem:[%s364_s1 + $0x28] sm:$0xff] }
   0x3   :  { %v210_v5 = vpack.c.bf16 %v36_v4, %v35_v2  ;;  %v214_v8 = vpack.c.bf16 %v38_v7, %v37_v6  ;;  %v39_v9 = vld [vmem:[%s364_s1 + $0x30] sm:$0xff]  ;;  %v31_v10 = vld [vmem:[%s363_s0] sm:$0xff]  ;;  %v40_v11 = vld [vmem:[%s364_s1 + $0x38] sm:$0xff] }
   0x4   :  { %207 = vmatprep.subr.bf16.mxu0 %v206_v3  ;;  %203 = vmatprep.mubr.f32.mxu0 %v31_v10  ;;  %v152_v12 = vld [vmem:[%s365_s2] ss:$0 sm:$0xff] }
   0x5   :  { %209 = vmatpush3.bf16.msra.mxu0 %v206_v3 }
   0x6   :  { %211 = vmatprep.subr.bf16.mxu0 %v210_v5 }
   0x7   :  { %8 = vsyncpa [#allocation4], 0  ;;  %28 = vst.msk [vmem:[#allocation2 + $0x8] sm:$0xff] %vm26_vm0, %v152_v12  ;;  %v218_v13 = vpack.c.bf16 %v40_v11, %v39_v9  ;;  %v41_v14 = vld [vmem:[%s364_s1 + $0x40] sm:$0xff]  ;;  %v42_v15 = vld [vmem:[%s364_s1 + $0x48] sm:$0xff] }
   0x8   :  { %27 = vst.msk [vmem:[#allocation2] sm:$0xff] %vm26_vm0, %v152_v12  ;;  %v222_v16 = vpack.c.bf16 %v42_v15, %v41_v14  ;;  %v43_v17 = vld [vmem:[%s364_s1 + $0x50] sm:$0xff]  ;;  %v44_v18 = vld [vmem:[%s364_s1 + $0x58] sm:$0xff]  ;;  %v45_v20 = vld [vmem:[%s364_s1 + $0x60] sm:$0xff] }
   0x9   :  { %213 = vmatpush3.bf16.msra.mxu0 %v210_v5  ;;  %v226_v19 = vpack.c.bf16 %v44_v18, %v43_v17  ;;  %v46_v21 = vld [vmem:[%s364_s1 + $0x68] sm:$0xff]  ;;  %v47_v23 = vld [vmem:[%s364_s1 + $0x70] sm:$0xff]  ;;  %v48_v24 = vld [vmem:[%s364_s1 + $0x78] sm:$0xff]  ;;  %s265_s1 = smov [#allocation3]  }
   0xa   :  { %215 = vmatprep.subr.bf16.mxu0 %v214_v8  ;;  %v230_v22 = vpack.c.bf16 %v46_v21, %v45_v20  ;;  %v234_v25 = vpack.c.bf16 %v48_v24, %v47_v23  ;;  %v32_v26 = vld [vmem:[%s363_s0 + $0x8] sm:$0xff]  ;;  %s141_s22 = sshll.u32 %s265_s1, 4  ;;  %s142_s22 = int_to_ptr.vmem [resolvable:$true] %s141_s22 }
   0xb   :  { %s241_s0 = scalar_lea.vmem %s142_s22, 256  ;;  %p246_p1 = scmp.lt.s32.totalorder %s142_s22, %s142_s22 }
   0xc   :  { %p242_p0 = scmp.ne.s32.totalorder %s142_s22, %s241_s0  ;;  %p247_p2 = scmp.lt.s32.totalorder %s241_s0, %s241_s0 }
   0xd   :  { %217 = vmatpush3.bf16.msra.mxu0 %v214_v8 }
   0xe   :  { %219 = vmatprep.subr.bf16.mxu0 %v218_v13  ;;  %v30_v27 = vld [vmem:[#allocation2 + $0x8] sm:$0xff]  ;;  %p248_p3 = por %p247_p2, %p246_p1 }
   0xf   :  { %v29_v28 = vld [vmem:[#allocation2] sm:$0xff] }
  0x10   :  { %p249_p4 = pnand %p248_p3, %p242_p0 }
  0x11   :  { %221 = vmatpush3.bf16.msra.mxu0 %v218_v13 }
  0x12   :  { %223 = vmatprep.subr.bf16.mxu0 %v222_v16 }
  0x15   :  { %225 = vmatpush3.bf16.msra.mxu0 %v222_v16 }
  0x16   :  { %227 = vmatprep.subr.bf16.mxu0 %v226_v19 }
  0x19   :  { %229 = vmatpush3.bf16.msra.mxu0 %v226_v19 }
  0x1a   :  { %231 = vmatprep.subr.bf16.mxu0 %v230_v22 }
  0x1d   :  { %233 = vmatpush3.bf16.msra.mxu0 %v230_v22 }
  0x1e   :  { %235 = vmatprep.subr.bf16.mxu0 %v234_v25 }
  0x21   :  { %237 = vmatpush3.bf16.msra.mxu0 %v234_v25 }
  0x24   :  { %204 = vmatmul.mubr.f32.vlgmr.msra.gmra.mrb[0].mxu0 %v32_v26 }
  0xf7   :  { %v205_v29 = vpop.f32.mrb[0].mxu0 }
  0xf8   :  { %v125_v30 = vadd.f32 %v205_v29, %v30_v27  ;;  %v115_v31 = vpop.f32.mrb[1].mxu0 }
  0xf9   :  { %v124_v32 = vadd.f32 %v115_v31, %v29_v28 }
  0xfa   :  { %128 = vst.msk [vmem:[#allocation2 + $0x8] sm:$0xff] %vm26_vm0, %v125_v30 }
  0xfb   :  { %127 = vst.msk [vmem:[#allocation2] sm:$0xff] %vm26_vm0, %v124_v32 }
 0x101   :  { %v133_v33 = vld [vmem:[#allocation2 + $0x8] sm:$0xff] }
 0x102   :  { %v132_v34 = vld [vmem:[#allocation2] sm:$0xff]  ;;  %135 = vst.msk [vmem:[#allocation3 + $0x8] sm:$0xff] %vm26_vm0, %v133_v33 }
 0x103   :  { %134 = vst.msk [vmem:[#allocation3] sm:$0xff] %vm26_vm0, %v132_v34 }
 0x104   :  { %252 = shalt.err (!%p249_p4)
}
 0x105   :  { %s253_s25 = scalar_lea.hbm %s366_s3, 256 }
 0x106   :  { %p254_p5 = scmp.ne.s32.totalorder %s366_s3, %s253_s25  ;;  %p257_p6 = scmp.lt.u32.totalorder %s253_s25, %s366_s3 }
 0x108   :  { %p259_p7 = pnand %p257_p6, %p254_p5 }
 0x10a   :  { %262 = shalt.err (!%p259_p7)
}
 0x10b   :  { %s266_s30 = smov 128   ;;  %s267_s4 = smov 8  }
 0x10c   :  { %147 = dma.vmem_to_hbm [thread:$0]  %s142_s22, 256, %s366_s3, [#allocation4], %s266_s30, %s266_s30, %s267_s4  }
 0x10d   :  { %263 = dma.done.wait [#allocation4], 256  }
 0x10e   :  { %264 = vsyncadd [#allocation4], 4294967040 }
 0x10f   :  { %151 = vsyncpa [#allocation4], 1 }

</bundles_post_ra>
